<compile_context>
chip_gen: v6e
topology: v6e:2x2x1
jax: 0.10.0
libtpu: 0.0.40
codegen_flags: <defaults>
</compile_context>

<pallas_src>
import functools

import jax
import jax.numpy as jnp
from jax import lax
from jax.experimental import pallas as pl
from jax.experimental.pallas import tpu as pltpu


def _caps_gemm_kernel(x_ref, w_ref, b_ref, o_ref):
    """One (Cout, K) @ (K, TM) GEMM tile + bias + ReLU.

    x_ref: (1, K, TM)    bf16  transposed im2col patches (lane dim = spatial)
    w_ref: (Cout, K)     bf16  transposed, flattened conv weight
    b_ref: (Cout, 1)     f32   bias
    o_ref: (1, Cout, TM) f32   conv output, channels-major (NCHW, spatial flat)
    """
    acc = jnp.dot(w_ref[...], x_ref[0],
                  preferred_element_type=jnp.float32)       # (Cout, TM) on MXU
    acc = jnp.maximum(acc + b_ref[...], 0.0)                 # bias + ReLU in f32
    o_ref[0] = acc.astype(o_ref.dtype)                       # lane-dense store


def primary_capsule_forward(x_nchw, w_hwio, bias, *, n_capsules, capsule_length,
                            strides=(1, 1), tm=256):
    """PrimaryCapsule forward.

    x_nchw: (B, Cin, H, W) float32
    w_hwio: (KH, KW, Cin, Cout) float32, Cout == n_capsules * capsule_length
    bias:   (Cout,) float32
    returns (B, capsule_length, Ho, Wo, n_capsules) float32
    """
    assert strides == (1, 1), "kernel implemented for the default stride (1, 1)"
    B, Cin, H, W = x_nchw.shape
    KH, KW, _, Cout = w_hwio.shape
    assert Cout == n_capsules * capsule_length

    ph, pw = KH // 2, KW // 2                  # pad=True -> filter_size // 2
    Ho = H + 2 * ph - KH + 1
    Wo = W + 2 * pw - KW + 1
    HW = Ho * Wo
    Kc = KH * KW * Cin

    # Spatial (lane) tile size.
    TM = min(tm, HW)
    if TM != HW:
        assert HW % TM == 0 and TM % 128 == 0, "pick TM dividing Ho*Wo, mult of 128"
    n_m = HW // TM

    # ---- XLA glue: transposed im2col + flattened/transposed weight (bf16) ----
    # patches_t[b, ci*KH*KW + kh*KW + kw, h*Wo + w] = x_pad[b, ci, h+kh, w+kw]
    x_pad = jnp.pad(x_nchw, ((0, 0), (0, 0), (ph, ph), (pw, pw)))
    taps = [x_pad[:, :, kh:kh + Ho, kw:kw + Wo]
            for kh in range(KH) for kw in range(KW)]          # each (B,Cin,Ho,Wo)
    patches = jnp.stack(taps, axis=2)                         # (B,Cin,KH*KW,Ho,Wo)
    patches_t = patches.reshape(B, Kc, HW).astype(jnp.bfloat16)

    # w_t[c, ci*KH*KW + kh*KW + kw] = w_hwio[kh, kw, ci, c]
    w_t = jnp.transpose(w_hwio, (3, 2, 0, 1)).reshape(Cout, Kc).astype(jnp.bfloat16)
    bias2d = bias.reshape(Cout, 1).astype(jnp.float32)

    cost = pl.CostEstimate(
        flops=2 * B * HW * Kc * Cout,
        transcendentals=0,
        bytes_accessed=(B * Kc * HW * 2) + (Cout * Kc * 2)
                       + (Cout * 4) + (B * Cout * HW * 4))

    conv_flat = pl.pallas_call(
        _caps_gemm_kernel,
        out_shape=jax.ShapeDtypeStruct((B, Cout, HW), jnp.float32),
        grid_spec=pltpu.PrefetchScalarGridSpec(
            num_scalar_prefetch=0,
            grid=(B, n_m),
            in_specs=[
                pl.BlockSpec((1, Kc, TM), lambda b, t: (b, 0, t)),
                pl.BlockSpec((Cout, Kc), lambda b, t: (0, 0)),
                pl.BlockSpec((Cout, 1), lambda b, t: (0, 0)),
            ],
            out_specs=pl.BlockSpec((1, Cout, TM), lambda b, t: (b, 0, t)),
        ),
        compiler_params=pltpu.CompilerParams(
            dimension_semantics=("parallel", "parallel"),
            vmem_limit_bytes=32 * 1024 * 1024),
        cost_estimate=cost,
    )(patches_t, w_t, bias2d)

    # ---- XLA glue: exactly the PyTorch view + permute on the NCHW conv output ----
    # y.view(B, L, N, Ho, Wo).permute(0, 1, 3, 4, 2)
    y = conv_flat.reshape(B, capsule_length, n_capsules, Ho, Wo)
    return jnp.transpose(y, (0, 1, 3, 4, 2))


def _reference(x_nchw, w_hwio, bias, *, n_capsules, capsule_length):
    """Pure-JAX reference (lax conv) with matching bf16 operands / f32 accum."""
    KH, KW, _, Cout = w_hwio.shape
    ph, pw = KH // 2, KW // 2
    y = lax.conv_general_dilated(
        x_nchw.astype(jnp.bfloat16), w_hwio.astype(jnp.bfloat16),
        window_strides=(1, 1), padding=[(ph, ph), (pw, pw)],
        dimension_numbers=("NCHW", "HWIO", "NCHW"),
        preferred_element_type=jnp.float32)
    y = jnp.maximum(y + bias.reshape(1, Cout, 1, 1), 0.0)
    B, _, Ho, Wo = y.shape
    y = y.reshape(B, capsule_length, n_capsules, Ho, Wo)
    return jnp.transpose(y, (0, 1, 3, 4, 2))


if __name__ == "__main__":
    # Small shapes consistent with the module:
    #   tensor_size=(B, Cin, H, W)=(2, 4, 16, 16), filter_size=3, stride (1,1)
    #   n_capsules=8, capsule_length=4  ->  out_channels = 32
    B, Cin, H, W = 2, 4, 16, 16
    KH = KW = 3
    n_capsules, capsule_length = 8, 4
    Cout = n_capsules * capsule_length

    key = jax.random.PRNGKey(0)
    kx, kw, kb = jax.random.split(key, 3)
    x = jax.random.normal(kx, (B, Cin, H, W), jnp.float32)
    # TODO(synk): exact Convolution-block weight init / bias flag are not given;
    # deterministic random weights + bias (nn.Conv2d-style) are used instead.
    w = jax.random.normal(kw, (KH, KW, Cin, Cout), jnp.float32) * 0.1
    b = jax.random.normal(kb, (Cout,), jnp.float32) * 0.1

    fwd = jax.jit(functools.partial(primary_capsule_forward,
                                    n_capsules=n_capsules,
                                    capsule_length=capsule_length))
    out = jax.block_until_ready(fwd(x, w, b))

    ref = _reference(x, w, b, n_capsules=n_capsules,
                     capsule_length=capsule_length)
    assert out.shape == (B, capsule_length, H, W, n_capsules), out.shape
    if not jnp.allclose(out, ref, rtol=1e-2, atol=1e-2):
        err = float(jnp.max(jnp.abs(out - ref)))
        raise AssertionError(
            f"Pallas PrimaryCapsule mismatch vs reference (max abs err {err})")
    print("KERNEL_OK")
</pallas_src>

<mosaic_0001>
module attributes {stable_mosaic.version = 11 : i64} {
  func.func @_caps_gemm_kernel(%arg0: i32, %arg1: i32, %arg2: memref<1x36x256xbf16, #tpu.memory_space<vmem>>, %arg3: memref<32x36xbf16, #tpu.memory_space<vmem>>, %arg4: memref<32x1xf32, #tpu.memory_space<vmem>>, %arg5: memref<1x32x256xf32, #tpu.memory_space<vmem>>) attributes {dimension_semantics = [#tpu.dimension_semantics<parallel>, #tpu.dimension_semantics<parallel>], iteration_bounds = array<i64: 2, 1>, scalar_prefetch = 0 : i64, scratch_operands = 0 : i64, tpu.core_type = #tpu.core_type<tc>, window_params = [{transform_indices = @transform_0, window_bounds = array<i64: 1, 36, 256>}, {pipeline_mode = #tpu.pipeline_mode<synchronous>, transform_indices = @transform_1, window_bounds = array<i64: 32, 36>}, {pipeline_mode = #tpu.pipeline_mode<synchronous>, transform_indices = @transform_2, window_bounds = array<i64: 32, 1>}, {transform_indices = @transform_3, window_bounds = array<i64: 1, 32, 256>}]} {
    %c0 = arith.constant 0 : index
    %c0_0 = arith.constant 0 : index
    %0 = vector.load %arg3[%c0, %c0_0] : memref<32x36xbf16, #tpu.memory_space<vmem>>, vector<32x36xbf16>
    %c0_1 = arith.constant 0 : index
    %c0_2 = arith.constant 0 : index
    %c0_3 = arith.constant 0 : index
    %1 = vector.load %arg2[%c0_1, %c0_2, %c0_3] : memref<1x36x256xbf16, #tpu.memory_space<vmem>>, vector<1x36x256xbf16>
    %2 = vector.shape_cast %1 : vector<1x36x256xbf16> to vector<36x256xbf16>
    %cst = arith.constant dense<0.000000e+00> : vector<32x256xf32>
    %3 = tpu.matmul %0, %2, %cst {dimension_numbers = #tpu.dot_dimension_numbers<[1], [0], [0], [1], [0, 0, 1, 1], [], []>} : vector<32x36xbf16>, vector<36x256xbf16>, vector<32x256xf32> -> vector<32x256xf32>
    %c0_4 = arith.constant 0 : index
    %c0_5 = arith.constant 0 : index
    %4 = vector.load %arg4[%c0_4, %c0_5] : memref<32x1xf32, #tpu.memory_space<vmem>>, vector<32x1xf32>
    %5 = vector.broadcast %4 : vector<32x1xf32> to vector<32x256xf32>
    %6 = arith.addf %3, %5 : vector<32x256xf32>
    %cst_6 = arith.constant 0.000000e+00 : f32
    %7 = vector.broadcast %cst_6 : f32 to vector<32x256xf32>
    %8 = arith.maximumf %6, %7 : vector<32x256xf32>
    %c0_7 = arith.constant 0 : index
    %c0_8 = arith.constant 0 : index
    %c0_9 = arith.constant 0 : index
    %9 = vector.load %arg5[%c0_7, %c0_8, %c0_9] : memref<1x32x256xf32, #tpu.memory_space<vmem>>, vector<1x32x256xf32>
    %10 = vector.shape_cast %9 : vector<1x32x256xf32> to vector<32x256xf32>
    %11 = vector.shape_cast %8 : vector<32x256xf32> to vector<1x32x256xf32>
    tpu.vector_store %arg5[%c0_7, %c0_8, %c0_9], %11 {strides = array<i32>} : memref<1x32x256xf32, #tpu.memory_space<vmem>>, vector<1x32x256xf32>,
    return
  }
  func.func @transform_0(%arg0: i32, %arg1: i32) -> (i32, i32, i32) {
    %c0_i32 = arith.constant 0 : i32
    %c0_i32_0 = arith.constant 0 : i32
    return %arg0, %c0_i32, %arg1 : i32, i32, i32
  }
  func.func @transform_1(%arg0: i32, %arg1: i32) -> (i32, i32) {
    %c0_i32 = arith.constant 0 : i32
    %c0_i32_0 = arith.constant 0 : i32
    %c0_i32_1 = arith.constant 0 : i32
    return %c0_i32, %c0_i32_0 : i32, i32
  }
  func.func @transform_2(%arg0: i32, %arg1: i32) -> (i32, i32) {
    %c0_i32 = arith.constant 0 : i32
    %c0_i32_0 = arith.constant 0 : i32
    %c0_i32_1 = arith.constant 0 : i32
    return %c0_i32, %c0_i32_0 : i32, i32
  }
  func.func @transform_3(%arg0: i32, %arg1: i32) -> (i32, i32, i32) {
    %c0_i32 = arith.constant 0 : i32
    %c0_i32_0 = arith.constant 0 : i32
    return %arg0, %c0_i32, %arg1 : i32, i32, i32
  }
}

</mosaic_0001>

<bundles_post_ra>
// kernel: primary_capsule_forward.1
= control target key start
LH: loop header
LB: loop body
LE: loop exit
PB: predicated region body
PF: predicated region fallthrough
CT: control target
= control target key end

     0   :  { %s560_s12 = smov 0   ;;  %s562_s13 = smov 0   ;;  %s615_s0 = inlined_call_operand.vmem [shape: bf16[2,36,256], index: 0, kind: input, shape index: {}]   ;;  %s616_s1 = inlined_call_operand.vmem [shape: bf16[32,36], index: 1, kind: input, shape index: {}]   ;;  %s617_s2 = inlined_call_operand.vmem [shape: f32[32,1], index: 2, kind: input, shape index: {}]   ;;  %s618_s3 = inlined_call_operand.vmem [shape: f32[2,32,256], index: 3, kind: output, shape index: {}]  }
   0x1   :  { %s564_s14 = smov 0  }
   0x2 LB: > { %s25_s15 = sadd.s32 1, %s533_s13  ;;  %p453_p0 = scmp.ge.s32.totalorder %s537_s14, 1  ;;  %s537_s14 = sphi %s564_s14, %s13_s14   ;;  %s533_s13 = sphi %s562_s13, %s620_s13   ;;  %s529_s12 = sphi %s560_s12, %s619_s12  }
   0x3   : > { %p27_p1 = scmp.ge.s32.totalorder %s25_s15, 2  ;;  %p158_p2 = scmp.lt.s32.totalorder %s537_s14, 3 }
   0x5   : > { %s622_s15 = smov (%p27_p1, %s25_s15), 0  ;;  %p159_p3 = pnand %p453_p0, %p158_p2 }
   0x6   : > { %p191_p4 = scmp.lt.s32.totalorder (!%p159_p3), %s529_s12, 1 }
   0x7   : > { %162 = sbr.rel (%p159_p3) target bundleno = 236 (0xec), region = 32 }
   0xc   : > { %v539_v0 = vmov 0   ;;  %s624_s12 = smov (!%p191_p4, %s529_s12), 1  ;;  %v222_v1 = vld [vmem:[%s617_s2 + $0x10] sm:$0xff]  ;;  %v220_v2 = vld [vmem:[%s617_s2] sm:$0xff]  ;;  %v223_v3 = vld [vmem:[%s617_s2 + $0x18] sm:$0xff]  ;;  %vm286_vm0 = vcmask 1041408  }
   0xd   : > { %325 = vmatprep.mubr.bf16.mxu0 %v539_v0  ;;  %335 = vmatprep.mubr.bf16.mxu1 %v539_v0  ;;  %s477_s20 = smul.u32 40, %s624_s12  ;;  %v221_v4 = vld [vmem:[%s617_s2 + $0x8] sm:$0xff]  ;;  %v513_v13 = vld [vmem:[%s616_s1] sm:$0xff]   ;;  %vm279_vm1 = vcmask 293888   ;;  %s470_s5 = sshll.u32 %s624_s12, 6 }
   0xe   : > { %504 = vset.pattern.permute.xlu1 %v539_v0  ;;  %503 = vset.pattern.permute.xlu0 %v539_v0  ;;  %v514_v14 = vld [vmem:[%s616_s1 + $0x8] sm:$0xff]   ;;  %s208_s8 = scalar_lea.vmem %s618_s3, %s470_s5 }
   0xf   : > { %236 = vperm.xlu1 %504, %v222_v1   ;;  %226 = vperm.xlu0 %503, %v220_v2   ;;  %s198_s27 = scalar_lea.vmem %s615_s0, %s477_s20 }
  0x10   : > { %v219_v5 = vld [vmem:[%s198_s27 + $0x20] sm:$0x33]  ;;  %v507_v8 = vld [vmem:[%s198_s27 + $0x14] ss:$8 sps:$4 sm:$0xff]   ;;  %v509_v10 = vld [vmem:[%s198_s27 + $0x10] ss:$8 sps:$4 sm:$0xff]  }
  0x11   : > { %v464_v6 = vcombine.high %v219_v5, %v219_v5  ;;  %v463_v7 = vcombine.low %v219_v5, %v219_v5  ;;  %v510_v11 = vld [vmem:[%s198_s27 + $0x4] ss:$8 sps:$4 sm:$0xff]   ;;  %v512_v12 = vld [vmem:[%s198_s27] ss:$8 sps:$4 sm:$0xff]  }
  0x13   : > { %241 = vperm.xlu1 %504, %v223_v3   ;;  %231 = vperm.xlu0 %503, %v221_v4   ;;  %v288_v9 = vsel %vm286_vm0, %v463_v7, 0 }
  0x14   : > { %465 = vmatprep.subr.msk.bf16.mxu0 %vm286_vm0, %v464_v6  ;;  %471 = vmatprep.subr.msk.bf16.mxu1 %vm286_vm0, %v464_v6 }
  0x15   : > { %304 = vmatpush1.bf16.msra.mxu0 %v288_v9  ;;  %474 = vmatpush1.bf16.msra.mxu1 %v288_v9 }
  0x16   : > { %305 = vmatprep.subr.bf16.mxu0 %v507_v8  ;;  %472 = vmatprep.subr.bf16.mxu1 %v507_v8 }
  0x19   : > { %306 = vmatpush1.bf16.msra.mxu0 %v509_v10  ;;  %475 = vmatpush1.bf16.msra.mxu1 %v509_v10 }
  0x1a   : > { %307 = vmatprep.subr.bf16.mxu0 %v510_v11  ;;  %473 = vmatprep.subr.bf16.mxu1 %v510_v11 }
  0x1d   : > { %308 = vmatpush1.bf16.msra.mxu0 %v512_v12  ;;  %476 = vmatpush1.bf16.msra.mxu1 %v512_v12 }
  0x20   : > { %466 = vmatmul.mubr.msk.bf16.vlgmr.msra.gmra.mxu0 %vm279_vm1, %v513_v13  ;;  %467 = vmatmul.mubr.msk.bf16.vlgmr.msra.gmra.mxu1 %vm279_vm1, %v514_v14 }
  0x8a   : > { %v237_v15 = vpop.permute.xlu1 %236  ;;  %v227_v16 = vpop.permute.xlu0 %226 }
  0x8e   : > { %v242_v25 = vpop.permute.xlu1 %241  ;;  %v232_v26 = vpop.permute.xlu0 %231 }
  0xe0   : > { %v327_v17 = vpop.f32.mrf.mxu0  ;;  %v337_v18 = vpop.f32.mrf.mxu1 }
  0xe1   : > { %v328_v19 = vadd.f32 %v327_v17, %v227_v16  ;;  %v338_v20 = vadd.f32 %v337_v18, %v237_v15 }
  0xe2   : > { %v329_v21 = vpop.f32.mrf.mxu0  ;;  %v339_v22 = vpop.f32.mrf.mxu1 }
  0xe3   : > { %v346_v23 = vmax.f32 %v328_v19, 0.0  ;;  %v350_v24 = vmax.f32 %v338_v20, 0.0  ;;  %v330_v27 = vadd.f32 %v329_v21, %v227_v16  ;;  %v340_v28 = vadd.f32 %v339_v22, %v237_v15 }
  0xe4   : > { %v331_v29 = vpop.f32.mrf.mxu0  ;;  %v341_v30 = vpop.f32.mrf.mxu1 }
  0xe5   : > { %354 = vst [vmem:[%s208_s8] sm:$0xff] %v346_v23  ;;  %358 = vst [vmem:[%s208_s8 + $0x20] sm:$0xff] %v350_v24  ;;  %v347_v31 = vmax.f32 %v330_v27, 0.0  ;;  %v351_v32 = vmax.f32 %v340_v28, 0.0  ;;  %v332_v33 = vadd.f32 %v331_v29, %v232_v26  ;;  %v342_v34 = vadd.f32 %v341_v30, %v242_v25 }
  0xe6   : > { %v333_v35 = vpop.f32.mrf.mxu0  ;;  %v343_v36 = vpop.f32.mrf.mxu1 }
  0xe7   : > { %355 = vst [vmem:[%s208_s8 + $0x8] sm:$0xff] %v347_v31  ;;  %359 = vst [vmem:[%s208_s8 + $0x28] sm:$0xff] %v351_v32  ;;  %v348_v37 = vmax.f32 %v332_v33, 0.0  ;;  %v352_v38 = vmax.f32 %v342_v34, 0.0  ;;  %v334_v39 = vadd.f32 %v333_v35, %v232_v26  ;;  %v344_v40 = vadd.f32 %v343_v36, %v242_v25 }
  0xe9   : > { %356 = vst [vmem:[%s208_s8 + $0x10] sm:$0xff] %v348_v37  ;;  %360 = vst [vmem:[%s208_s8 + $0x30] sm:$0xff] %v352_v38  ;;  %v349_v41 = vmax.f32 %v334_v39, 0.0  ;;  %v353_v42 = vmax.f32 %v344_v40, 0.0 }
  0xeb   : > { %357 = vst [vmem:[%s208_s8 + $0x18] sm:$0xff] %v349_v41  ;;  %361 = vst [vmem:[%s208_s8 + $0x38] sm:$0xff] %v353_v42 }
  0xec PF: > { %s13_s14 = sadd.s32 1, %s537_s14   ;;  %s619_s12 = smov %s533_s13 }
  0xed   : > { %p10_p5 = scmp.ge.s32.totalorder %s13_s14, 4   ;;  %s620_s13 = smov %s622_s15 }
  0xef   :  { %12 = sbr.rel (!%p10_p5) target bundleno = 2 (0x2), region = 62 }

</bundles_post_ra>
